<compile_context>
chip_gen: v7x
topology: tpu7x:2x2x1
jax: 0.10.0
libtpu: 0.0.40
codegen_flags: <defaults>
</compile_context>

<pallas_src>
import jax
import jax.numpy as jnp
from jax.experimental import pallas as pl
from jax.experimental.pallas import tpu as pltpu


_ROW_ALIGN = 8     # f32 sublane tile
_OUT_LANES = 128   # lane-dense output width -> unmasked vst + full (8,128) DMA tile


def _pad_rows(r):
    return r + (-r) % _ROW_ALIGN


def pack_params(params):
    """Pack all weights/biases into one [rows, COLS] f32 slab.

    Paired heads (mu|logvar, mean|std) are fused along the output (lane) axis
    so the kernel computes each pair with a single matmul. Every block starts
    at a sublane-aligned (multiple-of-8) row offset.
    Returns (slab, offsets) with offsets[name] = (row_off, rows, cols).
    """
    w_enc = jnp.concatenate([params["w_mu"], params["w_lv"]], axis=1)
    b_enc = jnp.concatenate([params["b_mu"], params["b_lv"]], axis=1)
    w_dec = jnp.concatenate([params["w_dm"], params["w_ds"]], axis=1)
    b_dec = jnp.concatenate([params["b_dm"], params["b_ds"]], axis=1)

    blocks = [
        ("w_e1", params["w_e1"]), ("w_e2", params["w_e2"]), ("w_enc", w_enc),
        ("w_d1", params["w_d1"]), ("w_d2", params["w_d2"]), ("w_dec", w_dec),
        ("b_e1", params["b_e1"]), ("b_e2", params["b_e2"]), ("b_enc", b_enc),
        ("b_d1", params["b_d1"]), ("b_d2", params["b_d2"]), ("b_dec", b_dec),
    ]
    cols = max(b.shape[1] for _, b in blocks)

    offsets = {}
    padded = []
    off = 0
    for name, blk in blocks:
        r, c = blk.shape
        rp = _pad_rows(r)
        offsets[name] = (off, r, c)
        padded.append(jnp.pad(blk.astype(jnp.float32),
                              ((0, rp - r), (0, cols - c))))
        off += rp
    slab = jnp.concatenate(padded, axis=0)
    return slab, offsets


def _make_kernel(offsets, latent, x_dim, out_cols):
    def blk(w_ref, name):
        off, r, c = offsets[name]
        return w_ref[off:off + r, 0:c]

    def kernel(x_ref, w_ref, out_ref):
        f32 = jnp.float32
        x = x_ref[...]

        # Hoist all (cheap) bias loads ahead of the strictly-serial matmul
        # chain: gives the scheduler filler work between MXU result pops.
        b_e1 = blk(w_ref, "b_e1")
        b_e2 = blk(w_ref, "b_e2")
        b_enc = blk(w_ref, "b_enc")
        b_d1 = blk(w_ref, "b_d1")
        b_d2 = blk(w_ref, "b_d2")
        b_dec = blk(w_ref, "b_dec")

        # ---------------- encoder ----------------
        h = jnp.maximum(
            jnp.dot(x, blk(w_ref, "w_e1"), preferred_element_type=f32) + b_e1, 0.0)
        h = jnp.maximum(
            jnp.dot(h, blk(w_ref, "w_e2"), preferred_element_type=f32) + b_e2, 0.0)
        # fused (mu | logvar) head -> [TB, 2*latent]
        z = jnp.dot(h, blk(w_ref, "w_enc"), preferred_element_type=f32) + b_enc
        z_mu = z[:, 0:latent]

        # eval path of VAE.forward: z_sample = z_mu (no sampling)
        # ---------------- decoder ----------------
        g = jnp.maximum(
            jnp.dot(z_mu, blk(w_ref, "w_d1"), preferred_element_type=f32) + b_d1, 0.0)
        g = jnp.maximum(
            jnp.dot(g, blk(w_ref, "w_d2"), preferred_element_type=f32) + b_d2, 0.0)
        # fused (mean | std_raw) head -> [TB, 2*x_dim]
        xo = jnp.dot(g, blk(w_ref, "w_dec"), preferred_element_type=f32) + b_dec

        # Per-lane select: first x_dim lanes stay as mean, next x_dim lanes
        # become std = stable_softplus(raw) + 1e-4 (no extra stores).
        sp = jnp.maximum(xo, 0.0) + jnp.log1p(jnp.exp(-jnp.abs(xo))) + 1e-4
        lane = jax.lax.broadcasted_iota(jnp.int32, xo.shape, 1)
        xo_out = jnp.where(lane < x_dim, xo, sp)

        # Single lane-dense, unmasked store of the full 128-lane row:
        #   [ z_mu | z_logvar | x_mean | x_std | zero pad ]
        tb = x.shape[0]
        row = jnp.concatenate(
            [z, xo_out, jnp.zeros((tb, _OUT_LANES - out_cols), f32)], axis=1)
        out_ref[...] = row

    return kernel


def make_vae_forward(offsets, slab_shape, x_dim, latent, batch, tb):
    """Build a jitted forward(x, slab) -> (z_mu, z_logvar, x_mean, x_std)."""
    assert batch % tb == 0 and tb % _ROW_ALIGN == 0
    hidden = offsets["w_e1"][2]
    out_cols = 2 * latent + 2 * x_dim
    assert out_cols <= _OUT_LANES

    kernel = _make_kernel(offsets, latent, x_dim, out_cols)

    flops = 2 * batch * (x_dim * hidden + hidden * hidden + hidden * 2 * latent
                         + latent * hidden + hidden * hidden + hidden * 2 * x_dim)
    bytes_accessed = 4 * (batch * x_dim
                          + slab_shape[0] * slab_shape[1]
                          + batch * _OUT_LANES)
    cost = pl.CostEstimate(flops=flops, transcendentals=2 * batch * x_dim,
                           bytes_accessed=int(bytes_accessed))

    grid_spec = pltpu.PrefetchScalarGridSpec(
        num_scalar_prefetch=0,
        grid=(batch // tb,),
        in_specs=[
            # per-step batch tile of x
            pl.BlockSpec((tb, x_dim), lambda i: (i, 0)),
            # weight slab: constant index_map -> DMA'd once, resident in VMEM
            pl.BlockSpec(slab_shape, lambda i: (0, 0)),
        ],
        out_specs=pl.BlockSpec((tb, _OUT_LANES), lambda i: (i, 0)),
    )

    call = pl.pallas_call(
        kernel,
        out_shape=jax.ShapeDtypeStruct((batch, _OUT_LANES), jnp.float32),
        grid_spec=grid_spec,
        compiler_params=pltpu.CompilerParams(
            dimension_semantics=("parallel",)),  # both TCs on v7x
        cost_estimate=cost,
    )

    @jax.jit
    def forward(x, slab):
        out = call(x, slab)
        # Slices fuse with the pallas_call under jit (no extra dispatches).
        z_mu = out[:, 0:latent]
        z_logvar = out[:, latent:2 * latent]
        x_mean = out[:, 2 * latent:2 * latent + x_dim]
        x_std = out[:, 2 * latent + x_dim:out_cols]
        return z_mu, z_logvar, x_mean, x_std

    return forward


def init_params(key, x_dim, hidden, latent):
    def linear(k, fan_in, fan_out):
        k1, k2 = jax.random.split(k)
        scale = 1.0 / jnp.sqrt(fan_in)
        w = jax.random.uniform(k1, (fan_in, fan_out), jnp.float32, -scale, scale)
        b = jax.random.uniform(k2, (1, fan_out), jnp.float32, -scale, scale)
        return w, b

    keys = jax.random.split(key, 8)
    p = {}
    p["w_e1"], p["b_e1"] = linear(keys[0], x_dim, hidden)
    p["w_e2"], p["b_e2"] = linear(keys[1], hidden, hidden)
    p["w_mu"], p["b_mu"] = linear(keys[2], hidden, latent)
    p["w_lv"], p["b_lv"] = linear(keys[3], hidden, latent)
    p["w_d1"], p["b_d1"] = linear(keys[4], latent, hidden)
    p["w_d2"], p["b_d2"] = linear(keys[5], hidden, hidden)
    p["w_dm"], p["b_dm"] = linear(keys[6], hidden, x_dim)
    p["w_ds"], p["b_ds"] = linear(keys[7], hidden, x_dim)
    return p


def vae_forward_ref(x, p):
    """Pure-JAX reference for correctness check (eval forward)."""
    h = jnp.maximum(x @ p["w_e1"] + p["b_e1"], 0.0)
    h = jnp.maximum(h @ p["w_e2"] + p["b_e2"], 0.0)
    z_mu = h @ p["w_mu"] + p["b_mu"]
    z_lv = h @ p["w_lv"] + p["b_lv"]
    g = jnp.maximum(z_mu @ p["w_d1"] + p["b_d1"], 0.0)
    g = jnp.maximum(g @ p["w_d2"] + p["b_d2"], 0.0)
    x_mean = g @ p["w_dm"] + p["b_dm"]
    x_std = jax.nn.softplus(g @ p["w_ds"] + p["b_ds"]) + 1e-4
    return z_mu, z_lv, x_mean, x_std


if __name__ == "__main__":
    B, X_DIM, HIDDEN, LATENT, TB = 128, 16, 32, 8, 32

    key = jax.random.PRNGKey(0)
    kx, kp = jax.random.split(key)
    x = jax.random.normal(kx, (B, X_DIM), jnp.float32)
    params = init_params(kp, X_DIM, HIDDEN, LATENT)

    # Pack the 16 weight/bias arrays once into a single VMEM-friendly slab.
    slab, offsets = pack_params(params)
    slab = jax.block_until_ready(slab)

    forward = make_vae_forward(offsets, slab.shape, X_DIM, LATENT, B, TB)
    outs = jax.block_until_ready(forward(x, slab))

    refs = vae_forward_ref(x, params)
    for o, r in zip(outs, refs):
        assert o.shape == r.shape and o.dtype == r.dtype
        assert jnp.allclose(o, r, atol=1e-5, rtol=1e-5), "mismatch vs reference"

    print("KERNEL_OK")
</pallas_src>

<mosaic_0001>
module attributes {stable_mosaic.version = 11 : i64} {
  func.func @kernel(%arg0: i32, %arg1: memref<32x16xf32, #tpu.memory_space<vmem>>, %arg2: memref<200x32xf32, #tpu.memory_space<vmem>>, %arg3: memref<32x128xf32, #tpu.memory_space<vmem>>) attributes {dimension_semantics = [#tpu.dimension_semantics<parallel>], iteration_bounds = array<i64: 4>, scalar_prefetch = 0 : i64, scratch_operands = 0 : i64, tpu.core_type = #tpu.core_type<tc>, window_params = [{transform_indices = @transform_0, window_bounds = array<i64: 32, 16>}, {pipeline_mode = #tpu.pipeline_mode<synchronous>, transform_indices = @transform_1, window_bounds = array<i64: 200, 32>}, {transform_indices = @transform_2, window_bounds = array<i64: 32, 128>}]} {
    %c0 = arith.constant 0 : index
    %c0_0 = arith.constant 0 : index
    %0 = vector.load %arg1[%c0, %c0_0] : memref<32x16xf32, #tpu.memory_space<vmem>>, vector<32x16xf32>
    %c152 = arith.constant 152 : index
    %c0_1 = arith.constant 0 : index
    %1 = vector.load %arg2[%c152, %c0_1] : memref<200x32xf32, #tpu.memory_space<vmem>>, vector<1x32xf32>
    %c160 = arith.constant 160 : index
    %c0_2 = arith.constant 0 : index
    %2 = vector.load %arg2[%c160, %c0_2] : memref<200x32xf32, #tpu.memory_space<vmem>>, vector<1x32xf32>
    %c168 = arith.constant 168 : index
    %c0_3 = arith.constant 0 : index
    %3 = vector.load %arg2[%c168, %c0_3] : memref<200x32xf32, #tpu.memory_space<vmem>>, vector<1x16xf32>
    %c176 = arith.constant 176 : index
    %c0_4 = arith.constant 0 : index
    %4 = vector.load %arg2[%c176, %c0_4] : memref<200x32xf32, #tpu.memory_space<vmem>>, vector<1x32xf32>
    %c184 = arith.constant 184 : index
    %c0_5 = arith.constant 0 : index
    %5 = vector.load %arg2[%c184, %c0_5] : memref<200x32xf32, #tpu.memory_space<vmem>>, vector<1x32xf32>
    %c192 = arith.constant 192 : index
    %c0_6 = arith.constant 0 : index
    %6 = vector.load %arg2[%c192, %c0_6] : memref<200x32xf32, #tpu.memory_space<vmem>>, vector<1x32xf32>
    %c0_7 = arith.constant 0 : index
    %c0_8 = arith.constant 0 : index
    %7 = vector.load %arg2[%c0_7, %c0_8] : memref<200x32xf32, #tpu.memory_space<vmem>>, vector<16x32xf32>
    %cst = arith.constant dense<0.000000e+00> : vector<32x32xf32>
    %8 = tpu.matmul %0, %7, %cst {dimension_numbers = #tpu.dot_dimension_numbers<[1], [0], [0], [1], [0, 0, 1, 1], [], []>} : vector<32x16xf32>, vector<16x32xf32>, vector<32x32xf32> -> vector<32x32xf32>
    %9 = vector.broadcast %1 : vector<1x32xf32> to vector<32x32xf32>
    %10 = arith.addf %8, %9 : vector<32x32xf32>
    %cst_9 = arith.constant 0.000000e+00 : f32
    %11 = vector.broadcast %cst_9 : f32 to vector<32x32xf32>
    %12 = arith.maximumf %10, %11 : vector<32x32xf32>
    %c16 = arith.constant 16 : index
    %c0_10 = arith.constant 0 : index
    %13 = vector.load %arg2[%c16, %c0_10] : memref<200x32xf32, #tpu.memory_space<vmem>>, vector<32x32xf32>
    %cst_11 = arith.constant dense<0.000000e+00> : vector<32x32xf32>
    %14 = tpu.matmul %12, %13, %cst_11 {dimension_numbers = #tpu.dot_dimension_numbers<[1], [0], [0], [1], [0, 0, 1, 1], [], []>} : vector<32x32xf32>, vector<32x32xf32>, vector<32x32xf32> -> vector<32x32xf32>
    %15 = vector.broadcast %2 : vector<1x32xf32> to vector<32x32xf32>
    %16 = arith.addf %14, %15 : vector<32x32xf32>
    %cst_12 = arith.constant 0.000000e+00 : f32
    %17 = vector.broadcast %cst_12 : f32 to vector<32x32xf32>
    %18 = arith.maximumf %16, %17 : vector<32x32xf32>
    %c48 = arith.constant 48 : index
    %c0_13 = arith.constant 0 : index
    %19 = vector.load %arg2[%c48, %c0_13] : memref<200x32xf32, #tpu.memory_space<vmem>>, vector<32x16xf32>
    %cst_14 = arith.constant dense<0.000000e+00> : vector<32x16xf32>
    %20 = tpu.matmul %18, %19, %cst_14 {dimension_numbers = #tpu.dot_dimension_numbers<[1], [0], [0], [1], [0, 0, 1, 1], [], []>} : vector<32x32xf32>, vector<32x16xf32>, vector<32x16xf32> -> vector<32x16xf32>
    %21 = vector.broadcast %3 : vector<1x16xf32> to vector<32x16xf32>
    %22 = arith.addf %20, %21 : vector<32x16xf32>
    %23 = vector.extract_strided_slice %22 {offsets = [0, 0], sizes = [32, 8], strides = [1, 1]} : vector<32x16xf32> to vector<32x8xf32>
    %c80 = arith.constant 80 : index
    %c0_15 = arith.constant 0 : index
    %24 = vector.load %arg2[%c80, %c0_15] : memref<200x32xf32, #tpu.memory_space<vmem>>, vector<8x32xf32>
    %cst_16 = arith.constant dense<0.000000e+00> : vector<32x32xf32>
    %25 = tpu.matmul %23, %24, %cst_16 {dimension_numbers = #tpu.dot_dimension_numbers<[1], [0], [0], [1], [0, 0, 1, 1], [], []>} : vector<32x8xf32>, vector<8x32xf32>, vector<32x32xf32> -> vector<32x32xf32>
    %26 = vector.broadcast %4 : vector<1x32xf32> to vector<32x32xf32>
    %27 = arith.addf %25, %26 : vector<32x32xf32>
    %cst_17 = arith.constant 0.000000e+00 : f32
    %28 = vector.broadcast %cst_17 : f32 to vector<32x32xf32>
    %29 = arith.maximumf %27, %28 : vector<32x32xf32>
    %c88 = arith.constant 88 : index
    %c0_18 = arith.constant 0 : index
    %30 = vector.load %arg2[%c88, %c0_18] : memref<200x32xf32, #tpu.memory_space<vmem>>, vector<32x32xf32>
    %cst_19 = arith.constant dense<0.000000e+00> : vector<32x32xf32>
    %31 = tpu.matmul %29, %30, %cst_19 {dimension_numbers = #tpu.dot_dimension_numbers<[1], [0], [0], [1], [0, 0, 1, 1], [], []>} : vector<32x32xf32>, vector<32x32xf32>, vector<32x32xf32> -> vector<32x32xf32>
    %32 = vector.broadcast %5 : vector<1x32xf32> to vector<32x32xf32>
    %33 = arith.addf %31, %32 : vector<32x32xf32>
    %cst_20 = arith.constant 0.000000e+00 : f32
    %34 = vector.broadcast %cst_20 : f32 to vector<32x32xf32>
    %35 = arith.maximumf %33, %34 : vector<32x32xf32>
    %c120 = arith.constant 120 : index
    %c0_21 = arith.constant 0 : index
    %36 = vector.load %arg2[%c120, %c0_21] : memref<200x32xf32, #tpu.memory_space<vmem>>, vector<32x32xf32>
    %cst_22 = arith.constant dense<0.000000e+00> : vector<32x32xf32>
    %37 = tpu.matmul %35, %36, %cst_22 {dimension_numbers = #tpu.dot_dimension_numbers<[1], [0], [0], [1], [0, 0, 1, 1], [], []>} : vector<32x32xf32>, vector<32x32xf32>, vector<32x32xf32> -> vector<32x32xf32>
    %38 = vector.broadcast %6 : vector<1x32xf32> to vector<32x32xf32>
    %39 = arith.addf %37, %38 : vector<32x32xf32>
    %cst_23 = arith.constant 0.000000e+00 : f32
    %40 = vector.broadcast %cst_23 : f32 to vector<32x32xf32>
    %41 = arith.maximumf %39, %40 : vector<32x32xf32>
    %42 = math.absf %39 : vector<32x32xf32>
    %cst_24 = arith.constant 0.000000e+00 : f32
    %43 = vector.broadcast %cst_24 : f32 to vector<32x32xf32>
    %44 = arith.subf %43, %42 : vector<32x32xf32>
    %45 = math.exp %44 : vector<32x32xf32>
    %46 = math.log1p %45 : vector<32x32xf32>
    %47 = arith.addf %41, %46 : vector<32x32xf32>
    %cst_25 = arith.constant 9.99999974E-5 : f32
    %48 = vector.broadcast %cst_25 : f32 to vector<32x32xf32>
    %49 = arith.addf %47, %48 : vector<32x32xf32>
    %50 = tpu.iota {dimensions = array<i32: 1>} : vector<32x32xi32>
    %c16_i32 = arith.constant 16 : i32
    %51 = vector.broadcast %c16_i32 : i32 to vector<32x32xi32>
    %52 = arith.cmpi slt, %50, %51 : vector<32x32xi32>
    %53 = arith.select %52, %39, %49 : vector<32x32xi1>, vector<32x32xf32>
    %cst_26 = arith.constant 0.000000e+00 : f32
    %54 = vector.broadcast %cst_26 : f32 to vector<32x80xf32>
    %55 = tpu.concatenate %22, %53, %54 in 1 : vector<32x16xf32>, vector<32x32xf32>, vector<32x80xf32> -> vector<32x128xf32>
    %c0_27 = arith.constant 0 : index
    %c0_28 = arith.constant 0 : index
    %56 = vector.load %arg3[%c0_27, %c0_28] : memref<32x128xf32, #tpu.memory_space<vmem>>, vector<32x128xf32>
    tpu.vector_store %arg3[%c0_27, %c0_28], %55 {strides = array<i32>} : memref<32x128xf32, #tpu.memory_space<vmem>>, vector<32x128xf32>,
    return
  }
  func.func @transform_0(%arg0: i32) -> (i32, i32) {
    %c0_i32 = arith.constant 0 : i32
    %c0_i32_0 = arith.constant 0 : i32
    return %arg0, %c0_i32 : i32, i32
  }
  func.func @transform_1(%arg0: i32) -> (i32, i32) {
    %c0_i32 = arith.constant 0 : i32
    %c0_i32_0 = arith.constant 0 : i32
    %c0_i32_1 = arith.constant 0 : i32
    return %c0_i32, %c0_i32_0 : i32, i32
  }
  func.func @transform_2(%arg0: i32) -> (i32, i32) {
    %c0_i32 = arith.constant 0 : i32
    %c0_i32_0 = arith.constant 0 : i32
    return %arg0, %c0_i32 : i32, i32
  }
}

</mosaic_0001>

<bundles_post_ra>
// kernel: forward.1
= control target key start
LH: loop header
LB: loop body
LE: loop exit
PB: predicated region body
PF: predicated region fallthrough
CT: control target
= control target key end

     0   :  { %s1200_s9 = smov 0   ;;  %s1367_s0 = inlined_call_operand.vmem [shape: f32[128,16], index: 0, kind: input, shape index: {}]   ;;  %s1368_s1 = inlined_call_operand.vmem [shape: f32[200,32], index: 1, kind: input, shape index: {}]   ;;  %s1369_s2 = inlined_call_operand.vmem [shape: f32[128,128], index: 2, kind: output, shape index: {}]  }
   0x1 LB: > { %s957_s10 = sadd.s32 4294967295, %s1182_s9   ;;  %p961_p0 = scmp.ge.s32.totalorder %s1182_s9, 1  ;;  %s1182_s9 = sphi %s1200_s9, %s12_s9  }
   0x2   : > { %p113_p1 = scmp.lt.s32.totalorder %s1182_s9, 5 }
   0x4   : > { %p114_p2 = pnand %p961_p0, %p113_p1 }
   0x5   : > { %v157_v0 = vld [vmem:[%s1368_s1] sm:$0xff] (!%p114_p2)  ;;  %v158_v1 = vld [vmem:[%s1368_s1 + $0x8] sm:$0xff] (!%p114_p2)  ;;  %s962_s15 = sshll.u32 (!%p114_p2), %s957_s10, 2  ;;  %v265_v2 = vld [vmem:[%s1368_s1 + $0x10] sm:$0xff] (!%p114_p2)  ;;  %vm163_vm0 = vcmask (!%p114_p2), 130048   ;;  %vm273_vm1 = vcmask (!%p114_p2), 261120  }
   0x6   : > { %117 = sbr.rel (%p114_p2) target bundleno = 1485 (0x5cd), region = 28  ;;  %v1115_v3 = vpack.c.bf16 (!%p114_p2), %v158_v1, %v157_v0  ;;  %p136_p3 = scmp.lt.s32.totalorder (!%p114_p2), %s962_s15, 15  ;;  %v266_v4 = vld [vmem:[%s1368_s1 + $0x18] sm:$0xff] (!%p114_p2)  ;;  %v267_v10 = vld [vmem:[%s1368_s1 + $0x20] sm:$0xff] (!%p114_p2)  ;;  %v268_v11 = vld [vmem:[%s1368_s1 + $0x28] sm:$0xff] (!%p114_p2)  ;;  %vm485_vm2 = vcmask (!%p114_p2), 64512  }
   0x7   : > { %v1119_v5 = vpack.c.bf16 (!%p114_p2), %v266_v4, %v265_v2  ;;  %v1123_v12 = vpack.c.bf16 (!%p114_p2), %v268_v11, %v267_v10  ;;  %v375_v13 = vld [vmem:[%s1368_s1 + $0x30] sm:$0xff] (!%p114_p2)  ;;  %v376_v14 = vld [vmem:[%s1368_s1 + $0x38] sm:$0xff] (!%p114_p2)  ;;  %v377_v29 = vld [vmem:[%s1368_s1 + $0x40] sm:$0xff] (!%p114_p2)  ;;  %s1184_s14 = smov (!%p114_p2), 16   ;;  %vm892_vm8 = vcmask (!%p114_p2), 392192  }
   0x8   : > { %1116 = vmatprep.subr.bf16.mxu0 (!%p114_p2), %v1115_v3  ;;  %v1127_v15 = vpack.c.bf16 (!%p114_p2), %v376_v14, %v375_v13  ;;  %v966_v16 = vld [vmem:[%s1368_s1 + $0x98] ss:$0 sm:$0xff] (!%p114_p2)  ;;  %v378_v30 = vld [vmem:[%s1368_s1 + $0x48] sm:$0xff] (!%p114_p2)  ;;  %v480_v32 = vld [vmem:[%s1368_s1 + $0x50] sm:$0xff] (!%p114_p2) }
   0x9   : > { %1118 = vmatpush3.bf16.msra.mxu0 (!%p114_p2), %v1115_v3  ;;  %1120 = vmatprep.subr.bf16.mxu1 (!%p114_p2), %v1119_v5  ;;  %v1131_v31 = vpack.c.bf16 (!%p114_p2), %v378_v30, %v377_v29  ;;  %v971_v33 = vld [vmem:[%s1368_s1 + $0xa0] ss:$0 sm:$0xff] (!%p114_p2)  ;;  %v587_v46 = vld [vmem:[%s1368_s1 + $0x58] sm:$0xff] (!%p114_p2)  ;;  %v976_v49 = vld [vmem:[%s1368_s1 + $0xa8] ss:$0 sm:$0xff] (!%p114_p2) }
   0xa   : > { %1122 = vmatpush3.bf16.msra.mxu1 (!%p114_p2), %v1119_v5  ;;  %1128 = vmatprep.subr.bf16.mxu0 (!%p114_p2), %v1127_v15  ;;  %v588_v47 = vld [vmem:[%s1368_s1 + $0x60] sm:$0xff] (!%p114_p2)  ;;  %v589_v58 = vld [vmem:[%s1368_s1 + $0x68] sm:$0xff] (!%p114_p2)  ;;  %v590_v59 = vld [vmem:[%s1368_s1 + $0x70] sm:$0xff] (!%p114_p2) }
   0xb   : > { %1124 = vmatprep.subr.bf16.mxu1 (!%p114_p2), %v1123_v12  ;;  %v1135_v48 = vpack.c.bf16 (!%p114_p2), %v588_v47, %v587_v46  ;;  %v1139_v60 = vpack.c.bf16 (!%p114_p2), %v590_v59, %v589_v58  ;;  %v696_v61 = vld [vmem:[%s1368_s1 + $0x78] sm:$0xff] (!%p114_p2)  ;;  %v697_v62 = vld [vmem:[%s1368_s1 + $0x80] sm:$0xff] (!%p114_p2)  ;;  %v981_v0 = vld [vmem:[%s1368_s1 + $0xb0] ss:$0 sm:$0xff] (!%p114_p2) }
   0xc   : > { %v1143_v63 = vpack.c.bf16 (!%p114_p2), %v697_v62, %v696_v61  ;;  %v698_v13 = vld [vmem:[%s1368_s1 + $0x88] sm:$0xff] (!%p114_p2)  ;;  %v699_v14 = vld [vmem:[%s1368_s1 + $0x90] sm:$0xff] (!%p114_p2)  ;;  %v991_v29 = vld [vmem:[%s1368_s1 + $0xc0] ss:$0 sm:$0xff] (!%p114_p2) }
   0xd   : > { %s1371_s15 = smov (!%p136_p3, %s962_s15), 15 }
   0xe   : > { %s963_s20 = sshll.u32 %s1371_s15, 3  ;;  %1126 = vmatpush3.bf16.msra.mxu1 %v1123_v12 }
   0xf   : > { %s139_s23 = scalar_lea.vmem %s1367_s0, %s963_s20  ;;  %1079 = vmatprep.subr.mxu1 %v480_v32  ;;  %s145_s18 = scalar_lea.vmem %s1369_s2, %s963_s20 }
  0x10   : > { %v147_v6 = vld [vmem:[%s139_s23] sm:$0xff]  ;;  %v148_v7 = vld [vmem:[%s139_s23 + $0x8] sm:$0xff]  ;;  %v149_v8 = vld [vmem:[%s139_s23 + $0x10] sm:$0xff] }
  0x11   : > { %1045 = vmatprep.mubr.msk.f32.mxu0 %vm163_vm0, %v147_v6  ;;  %v150_v9 = vld [vmem:[%s139_s23 + $0x18] sm:$0xff] }
  0x12   : > { %1046 = vmatmul.mubr.msk.f32.vlgmr.msra.gmra.mrb[0].mxu0 %vm163_vm0, %v148_v7 }
  0x13   : > { %1048 = vmatprep.mubr.msk.f32.mxu0 %vm163_vm0, %v149_v8  ;;  %1130 = vmatpush3.bf16.msra.mxu0 %v1127_v15  ;;  %v1147_v15 = vpack.c.bf16 %v699_v14, %v698_v13 }
  0x14   : > { %1132 = vmatprep.subr.bf16.mxu0 %v1131_v31 }
  0x16   : > { %1049 = vmatmul.mubr.msk.f32.gmra.mrb[2].mxu0 %vm163_vm0, %v150_v9 }
  0x17   : > { %1134 = vmatpush3.bf16.msra.mxu0 %v1131_v31 }
  0x18   : > { %1136 = vmatprep.subr.bf16.mxu0 %v1135_v48 }
  0xe5   : > { %v1047_v17 = vpop.f32.mrb[0].mxu0 }
  0xe6   : > { %v248_v18 = vadd.f32 %v1047_v17, %v966_v16  ;;  %v242_v19 = vpop.f32.mrb[1].mxu0 }
  0xe7   : > { %v243_v20 = vadd.f32 %v966_v16, %v242_v19 }
  0xe8   : > { %v262_v23 = vmax.f32 %v248_v18, 0.0 }
  0xe9   : > { %v261_v21 = vmax.f32 %v243_v20, 0.0  ;;  %v1050_v22 = vpop.f32.mrb[2].mxu0 }
  0xea   : > { %v258_v24 = vadd.f32 %v1050_v22, %v966_v16  ;;  %v252_v25 = vpop.f32.mrb[3].mxu0 }
  0xeb   : > { %v253_v26 = vadd.f32 %v966_v16, %v252_v25  ;;  %1059 = vmatprep.mubr.msk.f32.mxu1 %vm273_vm1, %v261_v21  ;;  %v986_v16 = vld [vmem:[%s1368_s1 + $0xb8] ss:$0 sm:$0xff] }
  0xec   : > { %1060 = vmatmul.mubr.msk.f32.vlgmr.msra.gmra.mrb[0].mxu1 %vm273_vm1, %v262_v23  ;;  %v264_v28 = vmax.f32 %v258_v24, 0.0 }
  0xed   : > { %v263_v27 = vmax.f32 %v253_v26, 0.0  ;;  %1080 = vmatpush3.msra.mxu1 %v480_v32 }
  0xee   : > { %1144 = vmatprep.subr.bf16.mxu1 %v1143_v63 }
  0xef   : > { %1062 = vmatprep.mubr.msk.f32.mxu1 %vm273_vm1, %v263_v27 }
  0xf0   : > { %1063 = vmatmul.mubr.msk.f32.gmra.mrb[2].mxu1 %vm273_vm1, %v264_v28 }
 0x1bf   : > { %v1061_v34 = vpop.f32.mrb[0].mxu1 }
 0x1c0   : > { %v358_v35 = vadd.f32 %v1061_v34, %v971_v33  ;;  %v352_v36 = vpop.f32.mrb[1].mxu1 }
 0x1c1   : > { %v353_v37 = vadd.f32 %v971_v33, %v352_v36 }
 0x1c2   : > { %v372_v40 = vmax.f32 %v358_v35, 0.0 }
 0x1c3   : > { %v371_v38 = vmax.f32 %v353_v37, 0.0  ;;  %v1064_v39 = vpop.f32.mrb[2].mxu1 }
 0x1c4   : > { %v368_v41 = vadd.f32 %v1064_v39, %v971_v33  ;;  %v362_v42 = vpop.f32.mrb[3].mxu1 }
 0x1c5   : > { %v363_v43 = vadd.f32 %v971_v33, %v362_v42  ;;  %1073 = vmatprep.mubr.msk.f32.mxu0 %vm273_vm1, %v371_v38 }
 0x1c6   : > { %1074 = vmatmul.mubr.msk.f32.vlgmr.msra.gmra.mrb[4].mxu0 %vm273_vm1, %v372_v40  ;;  %v374_v45 = vmax.f32 %v368_v41, 0.0 }
 0x1c7   : > { %v373_v44 = vmax.f32 %v363_v43, 0.0  ;;  %1138 = vmatpush3.bf16.msra.mxu0 %v1135_v48 }
 0x1c8   : > { %1140 = vmatprep.subr.bf16.mxu0 %v1139_v60 }
 0x1c9   : > { %1076 = vmatprep.mubr.msk.f32.mxu0 %vm273_vm1, %v373_v44 }
 0x1ca   : > { %1077 = vmatmul.mubr.msk.f32.gmra.mrb[6].mxu0 %vm273_vm1, %v374_v45 }
 0x1cb   : > { %1142 = vmatpush3.bf16.msra.mxu0 %v1139_v60 }
 0x299   : > { %v1075_v50 = vpop.f32.mrb[4].mxu0 }
 0x29a   : > { %v461_v51 = vpop.f32.mrb[5].mxu0  ;;  %v1278_v53 = vadd.f32 %v1075_v50, %v976_v49 }
 0x29b   : > { %v1276_v52 = vadd.f32 %v976_v49, %v461_v51 }
 0x29d   : > { %v1078_v54 = vpop.f32.mrb[6].mxu0  ;;  %1081 = vmatprep.mubr.msk.f32.mxu1 %vm485_vm2, %v1276_v52 }
 0x29e   : > { %v471_v55 = vpop.f32.mrb[7].mxu0  ;;  %1082 = vmatmul.mubr.msk.f32.vlgmr.msra.gmra.mrb[4].mxu1 %vm485_vm2, %v1278_v53  ;;  %v1284_v57 = vadd.f32 %v1078_v54, %v976_v49 }
 0x29f   : > { %v1282_v56 = vadd.f32 %v976_v49, %v471_v55  ;;  %1146 = vmatpush3.bf16.msra.mxu1 %v1143_v63 }
 0x2a0   : > { %1148 = vmatprep.subr.bf16.mxu1 %v1147_v15 }
 0x2a1   : > { %1084 = vmatprep.mubr.msk.f32.mxu1 %vm485_vm2, %v1282_v56 }
 0x2a2   : > { %1085 = vmatmul.mubr.msk.f32.gmra.mrb[6].mxu1 %vm485_vm2, %v1284_v57 }
 0x2a3   : > { %1150 = vmatpush3.bf16.msra.mxu1 %v1147_v15 }
 0x371   : > { %v1083_v1 = vpop.f32.mrb[4].mxu1 }
 0x372   : > { %v570_v2 = vadd.f32 %v1083_v1, %v981_v0  ;;  %v564_v3 = vpop.f32.mrb[5].mxu1 }
 0x373   : > { %v565_v4 = vadd.f32 %v981_v0, %v564_v3 }
 0x374   : > { %v584_v7 = vmax.f32 %v570_v2, 0.0 }
 0x375   : > { %v583_v5 = vmax.f32 %v565_v4, 0.0  ;;  %v1086_v6 = vpop.f32.mrb[6].mxu1 }
 0x376   : > { %v580_v8 = vadd.f32 %v1086_v6, %v981_v0  ;;  %v574_v9 = vpop.f32.mrb[7].mxu1 }
 0x377   : > { %v575_v10 = vadd.f32 %v981_v0, %v574_v9  ;;  %1095 = vmatprep.mubr.msk.f32.mxu0 %vm273_vm1, %v583_v5  ;;  %v865_v0 = vlaneseq }
 0x378   : > { %1096 = vmatmul.mubr.msk.f32.vlgmr.msra.gmra.mrb[8].mxu0 %vm273_vm1, %v584_v7  ;;  %v586_v12 = vmax.f32 %v580_v8, 0.0 }
 0x379   : > { %v585_v11 = vmax.f32 %v575_v10, 0.0  ;;  %v866_v9 = vand.u32 127, %v865_v0 }
 0x37b   : > { %1098 = vmatprep.mubr.msk.f32.mxu0 %vm273_vm1, %v585_v11  ;;  %vm867_vm5 = vcmp.lt.s32.totalorder %v866_v9, 16 }
 0x37c   : > { %1099 = vmatmul.mubr.msk.f32.gmra.mrb[10].mxu0 %vm273_vm1, %v586_v12 }
 0x44b   : > { %v1097_v17 = vpop.f32.mrb[8].mxu0 }
 0x44c   : > { %v679_v18 = vadd.f32 %v1097_v17, %v986_v16  ;;  %v673_v19 = vpop.f32.mrb[9].mxu0 }
 0x44d   : > { %v674_v20 = vadd.f32 %v986_v16, %v673_v19 }
 0x44e   : > { %v693_v23 = vmax.f32 %v679_v18, 0.0 }
 0x44f   : > { %v692_v21 = vmax.f32 %v674_v20, 0.0  ;;  %v1100_v22 = vpop.f32.mrb[10].mxu0 }
 0x450   : > { %v689_v24 = vadd.f32 %v1100_v22, %v986_v16  ;;  %v683_v25 = vpop.f32.mrb[11].mxu0 }
 0x451   : > { %v684_v26 = vadd.f32 %v986_v16, %v683_v25  ;;  %1109 = vmatprep.mubr.msk.f32.mxu1 %vm273_vm1, %v692_v21 }
 0x452   : > { %1110 = vmatmul.mubr.msk.f32.vlgmr.msra.gmra.mrb[8].mxu1 %vm273_vm1, %v693_v23  ;;  %v695_v28 = vmax.f32 %v689_v24, 0.0 }
 0x453   : > { %v694_v27 = vmax.f32 %v684_v26, 0.0 }
 0x455   : > { %1112 = vmatprep.mubr.msk.f32.mxu1 %vm273_vm1, %v694_v27 }
 0x456   : > { %1113 = vmatmul.mubr.msk.f32.gmra.mrb[10].mxu1 %vm273_vm1, %v695_v28 }
 0x525   : > { %v1111_v30 = vpop.f32.mrb[8].mxu1 }
 0x526   : > { %v1323_v31 = vadd.f32 %v1111_v30, %v991_v29  ;;  %v782_v32 = vpop.f32.mrb[9].mxu1 }
 0x527   : > { %v1325_v33 = vadd.f32 %v991_v29, %v782_v32 }
 0x528   : > { %v806_v34 = vand.u32 2147483647, %v1323_v31  ;;  %v802_v8 = vmax.f32 %v1323_v31, 0.0 }
 0x529   : > { %v805_v35 = vand.u32 2147483647, %v1325_v33  ;;  %v1114_v36 = vpop.f32.mrb[10].mxu1  ;;  %v801_v18 = vmax.f32 %v1325_v33, 0.0 }
 0x52a   : > { %v810_v37 = vsub.f32 0.0, %v806_v34  ;;  %v1329_v38 = vadd.f32 %v1114_v36, %v991_v29  ;;  %v792_v39 = vpop.f32.mrb[11].mxu1 }
 0x52b   : > { %v809_v40 = vsub.f32 0.0, %v805_v35  ;;  %v1331_v41 = vadd.f32 %v991_v29, %v792_v39 }
 0x52c   : > { %v815_v42 = vmul.f32 1.442695, %v810_v37  ;;  %v808_v43 = vand.u32 2147483647, %v1329_v38  ;;  %v804_v28 = vmax.f32 %v1329_v38, 0.0 }
 0x52d   : > { %v813_v44 = vmul.f32 1.442695, %v809_v40  ;;  %v807_v45 = vand.u32 2147483647, %v1331_v41  ;;  %v803_v32 = vmax.f32 %v1331_v41, 0.0 }
 0x52e   : > { %1160 = vpow2.f32 %v815_v42  ;;  %v812_v46 = vsub.f32 0.0, %v808_v43 }
 0x52f   : > { %1162 = vpow2.f32 %v813_v44  ;;  %v811_v47 = vsub.f32 0.0, %v807_v45 }
 0x530   : > { %v819_v48 = vmul.f32 1.442695, %v812_v46 }
 0x531   : > { %v817_v49 = vmul.f32 1.442695, %v811_v47 }
 0x532   : > { %1164 = vpow2.f32 %v819_v48 }
 0x533   : > { %1166 = vpow2.f32 %v817_v49 }
 0x538   : > { %v1161_v50 = vpop.eup %1160 }
 0x539   : > { %v1163_v51 = vpop.eup %1162  ;;  %v830_v54 = vadd.f32 1.0, %v1161_v50  ;;  %v833_v62 = vmul.f32 -0.5, %v1161_v50  ;;  %v836_v2 = vand.u32 2147483647, %v1161_v50 }
 0x53a   : > { %v821_v55 = vadd.f32 1.0, %v1163_v51  ;;  %v824_v63 = vmul.f32 -0.5, %v1163_v51  ;;  %v827_v6 = vand.u32 2147483647, %v1163_v51 }
 0x53b   : > { %1168 = vlog2.f32 %v830_v54  ;;  %v834_v1 = vadd.f32 1.0, %v833_v62  ;;  %vm837_vm3 = vcmp.lt.f32.partialorder %v836_v2, 0.0004427343 }
 0x53c   : > { %v1165_v58 = vpop.eup %1164  ;;  %1170 = vlog2.f32 %v821_v55  ;;  %v825_v4 = vadd.f32 1.0, %v824_v63  ;;  %vm828_vm4 = vcmp.lt.f32.partialorder %v827_v6, 0.0004427343 }
 0x53d   : > { %v1167_v59 = vpop.eup %1166  ;;  %v848_v60 = vadd.f32 1.0, %v1165_v58  ;;  %v851_v3 = vmul.f32 -0.5, %v1165_v58  ;;  %v835_v12 = vmul.f32 %v1161_v50, %v834_v1  ;;  %v854_v17 = vand.u32 2147483647, %v1165_v58 }
 0x53e   : > { %v839_v61 = vadd.f32 1.0, %v1167_v59  ;;  %v842_v5 = vmul.f32 -0.5, %v1167_v59  ;;  %v826_v15 = vmul.f32 %v1163_v51, %v825_v4  ;;  %v845_v19 = vand.u32 2147483647, %v1167_v59 }
 0x53f   : > { %1172 = vlog2.f32 %v848_v60  ;;  %v852_v13 = vadd.f32 1.0, %v851_v3  ;;  %vm855_vm6 = vcmp.lt.f32.partialorder %v854_v17, 0.0004427343 }
 0x540   : > { %1174 = vlog2.f32 %v839_v61  ;;  %v843_v16 = vadd.f32 1.0, %v842_v5  ;;  %vm846_vm7 = vcmp.lt.f32.partialorder %v845_v19, 0.0004427343 }
 0x541   : > { %v853_v27 = vmul.f32 %v1165_v58, %v852_v13 }
 0x542   : > { %v844_v30 = vmul.f32 %v1167_v59, %v843_v16 }
 0x545   : > { %v1169_v7 = vpop.eup %1168 }
 0x546   : > { %v1171_v10 = vpop.eup %1170  ;;  %v832_v11 = vmul.f32 0.6931472, %v1169_v7 }
 0x547   : > { %v823_v14 = vmul.f32 0.6931472, %v1171_v10 }
 0x548   : > { %v838_v20 = vsel %vm837_vm3, %v835_v12, %v832_v11 }
 0x549   : > { %v1173_v21 = vpop.eup %1172  ;;  %v829_v22 = vsel %vm828_vm4, %v826_v15, %v823_v14  ;;  %v858_v25 = vadd.f32 %v838_v20, %v802_v8 }
 0x54a   : > { %v1175_v23 = vpop.eup %1174  ;;  %v857_v24 = vadd.f32 %v829_v22, %v801_v18  ;;  %v850_v26 = vmul.f32 0.6931472, %v1173_v21 }
 0x54b   : > { %v841_v29 = vmul.f32 0.6931472, %v1175_v23  ;;  %v862_v40 = vadd.f32 0.0001, %v858_v25 }
 0x54c   : > { %v861_v34 = vadd.f32 0.0001, %v857_v24  ;;  %v856_v35 = vsel %vm855_vm6, %v853_v27, %v850_v26 }
 0x54d   : > { %v847_v36 = vsel %vm846_vm7, %v844_v30, %v841_v29  ;;  %v860_v42 = vadd.f32 %v856_v35, %v804_v28  ;;  %v869_v45 = vsel %vm867_vm5, %v1323_v31, %v862_v40 }
 0x54e   : > { %v868_v37 = vsel %vm867_vm5, %v1325_v33, %v861_v34  ;;  %v859_v39 = vadd.f32 %v847_v36, %v803_v32 }
 0x54f   : > { %876 = vrot.lane.b32.xlu0 %v868_v37, %s1184_s14  ;;  %v864_v46 = vadd.f32 0.0001, %v860_v42 }
 0x550   : > { %v863_v43 = vadd.f32 0.0001, %v859_v39 }
 0x551   : > { %v871_v47 = vsel %vm867_vm5, %v1329_v38, %v864_v46 }
 0x552   : > { %v870_v44 = vsel %vm867_vm5, %v1331_v41, %v863_v43 }
 0x553   : > { %880 = vrot.lane.b32.xlu1 %v870_v44, %s1184_s14  ;;  %878 = vrot.lane.b32.xlu0 %v869_v45, %s1184_s14 }
 0x557   : > { %882 = vrot.lane.b32.xlu1 %v871_v47, %s1184_s14 }
 0x5c1   : > { %v877_v33 = vpop.permute.xlu0 %876 }
 0x5c2   : > { %v888_v41 = vsel %vm163_vm0, %v1276_v52, %v877_v33 }
 0x5c3   : > { %v893_v48 = vsel %vm892_vm8, %v888_v41, 0.0 }
 0x5c4   : > { %897 = vst [vmem:[%s145_s18] sm:$0xff] %v893_v48 }
 0x5c5   : > { %v881_v31 = vpop.permute.xlu1 %880  ;;  %v879_v49 = vpop.permute.xlu0 %878 }
 0x5c6   : > { %v890_v50 = vsel %vm163_vm0, %v1282_v56, %v881_v31  ;;  %v889_v38 = vsel %vm163_vm0, %v1278_v53, %v879_v49 }
 0x5c7   : > { %v895_v51 = vsel %vm892_vm8, %v890_v50, 0.0  ;;  %v894_v54 = vsel %vm892_vm8, %v889_v38, 0.0 }
 0x5c8   : > { %899 = vst [vmem:[%s145_s18 + $0x10] sm:$0xff] %v895_v51  ;;  %898 = vst [vmem:[%s145_s18 + $0x8] sm:$0xff] %v894_v54 }
 0x5c9   : > { %v883_v55 = vpop.permute.xlu1 %882 }
 0x5ca   : > { %v891_v52 = vsel %vm163_vm0, %v1284_v57, %v883_v55 }
 0x5cb   : > { %v896_v58 = vsel %vm892_vm8, %v891_v52, 0.0 }
 0x5cc   : > { %900 = vst [vmem:[%s145_s18 + $0x18] sm:$0xff] %v896_v58 }
 0x5cd PF: > { %s12_s9 = sadd.s32 1, %s1182_s9  }
 0x5ce   : > { %p9_p4 = scmp.ge.s32.totalorder %s12_s9, 6  }
 0x5d0   :  { %11 = sbr.rel (!%p9_p4) target bundleno = 1 (0x1), region = 58 }

</bundles_post_ra>
